<compile_context>
chip_gen: v7x
topology: tpu7x:2x2x1
jax: 0.10.0
libtpu: 0.0.40
codegen_flags: <defaults>
</compile_context>

<pallas_src>
import jax
import jax.numpy as jnp
from jax import lax
from jax.experimental import pallas as pl
from jax.experimental.pallas import tpu as pltpu

NEG_SLOPE = 0.01   # F.leaky_relu default
LN_EPS = 1e-5      # nn.LayerNorm default


def _round_up(x, m):
    return (x + m - 1) // m * m


def _vmem_capacity_bytes():
    """Physical VMEM of the local TPU generation (conservative fallback if unknown)."""
    try:
        info = pltpu.get_tpu_info()
        cap = getattr(info, "vmem_capacity_bytes", None)
        if cap:
            return int(cap)
    except Exception:
        pass
    return 64 * 1024 * 1024   # v7x-sized fallback: safe on every generation


def _residual_block_kernel(x_ref, params_ref, wt_ref, o_ref):
    """x_ref / o_ref: (tm, E) row tile.
    params_ref: (3, E) f32 = [gamma; beta; bias], whole array resident in VMEM.
    wt_ref: (E, E) pre-transposed weight (in_features x out_features), resident in VMEM."""
    xf = x_ref[...].astype(jnp.float32)
    inv_e = jnp.float32(1.0 / xf.shape[-1])

    # ---- LayerNorm (statistics in f32). `centered` is reused for the normalization,
    # so only one extra (tm, E) f32 temporary is live beyond xf. ----
    mean = jnp.sum(xf, axis=-1, keepdims=True) * inv_e
    centered = xf - mean
    var = jnp.sum(centered * centered, axis=-1, keepdims=True) * inv_e

    gamma = params_ref[0:1, :]
    beta = params_ref[1:2, :]
    bias = params_ref[2:3, :]
    xn = centered * lax.rsqrt(var + LN_EPS) * gamma + beta

    # ---- Linear: xn @ W^T.  W was transposed once in the wrapper, so this is a plain
    # matmul on the MXU (no per-step transpose); accumulate in f32. ----
    y = jnp.dot(xn.astype(wt_ref.dtype), wt_ref[...],
                preferred_element_type=jnp.float32)
    y = y + bias

    # ---- leaky_relu + residual ----
    y = jnp.where(y >= 0.0, y, NEG_SLOPE * y)
    o_ref[...] = (xf + y).astype(o_ref.dtype)


def residual_block(vertices, gamma, beta, weight, bias, *, tm_max=1024, mxu_dtype=None):
    """vertices: [..., E];  weight: [E, E] (PyTorch layout: out_features x in_features).

    mxu_dtype: optional operand dtype for the matmul (e.g. jnp.bfloat16 on v6e/v7x,
    halves weight VMEM/DMA and runs the MXU at native rate).  Default None keeps the
    module's fp32 forward semantics.  Note: v7x MXU has no int path (bf16/fp8 only).
    """
    orig_shape = vertices.shape
    E = orig_shape[-1]
    x2d = vertices.reshape(-1, E)          # metadata-only reshape, no HBM pass
    M = x2d.shape[0]

    # One-time ExE transpose so the kernel contracts over W^T's leading axis.
    wt = weight.T
    if mxu_dtype is not None:
        wt = wt.astype(mxu_dtype)
    params = jnp.stack([
        gamma.reshape(-1).astype(jnp.float32),
        beta.reshape(-1).astype(jnp.float32),
        bias.reshape(-1).astype(jnp.float32),
    ])                                     # (3, E) fused -> one resident VMEM operand

    bx = x2d.dtype.itemsize
    bw = wt.dtype.itemsize
    sub = max(8, 32 // bx)                 # sublane multiple: 8 f32, 16 bf16, 32 int8/fp8

    # --- Per-generation VMEM budget (~75% of physical: ~96 MiB v5e/v6e, ~48 MiB v7x). ---
    vmem_cap = _vmem_capacity_bytes()
    budget = int(vmem_cap * 0.75)
    weight_bytes = E * E * bw              # single-buffered (memory_space=VMEM, resident)
    params_bytes = 3 * E * 4               # single-buffered
    per_row = 2 * E * bx                   # x row tile   (double-buffered by the pipeline)
    per_row += 2 * E * bx                  # out row tile (double-buffered)
    per_row += 5 * E * 4                   # in-kernel f32 temporaries (xf/centered/xn/y + slack)
    avail = budget - weight_bytes - params_bytes
    if avail < sub * per_row:
        # TODO(synk): add a second grid axis over output columns with (E, tn) weight
        # blocks (per-column-block bias) once the ExE weight exceeds the VMEM budget.
        raise NotImplementedError(
            f"ExE weight ({weight_bytes / 2**20:.1f} MiB, E={E}) does not fit the "
            f"{budget / 2**20:.0f} MiB VMEM budget; column-split grid not implemented")

    # Row tile: as large as the budget allows, rounded to the sublane multiple, but
    # always split into >= 2 grid steps so the 'parallel' axis can use both v7x
    # TensorCores (one extra ~0.35us grid step is noise on single-TC chips).
    tm_cap = avail // per_row
    tm_half = _round_up(pl.cdiv(M, 2), sub)
    tm = max(sub, (min(tm_max, tm_cap, tm_half) // sub) * sub)
    grid_m = pl.cdiv(M, tm)                # partial last block is masked by Pallas

    working_set = weight_bytes + params_bytes + tm * per_row
    vmem_limit = int(min(vmem_cap * 0.9,                      # headroom for Mosaic scratch
                         max(32 * 1024 * 1024, working_set * 1.5)))

    out = pl.pallas_call(
        _residual_block_kernel,
        out_shape=jax.ShapeDtypeStruct((M, E), vertices.dtype),
        grid_spec=pltpu.PrefetchScalarGridSpec(
            num_scalar_prefetch=0,
            grid=(grid_m,),
            in_specs=[
                pl.BlockSpec((tm, E), lambda i: (i, 0)),            # activation row tile
                pl.BlockSpec(memory_space=pltpu.MemorySpace.VMEM),  # [gamma; beta; bias]
                pl.BlockSpec(memory_space=pltpu.MemorySpace.VMEM),  # W^T, VMEM-resident
            ],
            out_specs=pl.BlockSpec((tm, E), lambda i: (i, 0)),
        ),
        compiler_params=pltpu.CompilerParams(
            dimension_semantics=("parallel",),
            vmem_limit_bytes=vmem_limit,
        ),
    )(x2d, params, wt)

    return out.reshape(orig_shape)


def _reference(vertices, gamma, beta, weight, bias):
    x = vertices.astype(jnp.float32)
    mean = jnp.mean(x, axis=-1, keepdims=True)
    var = jnp.mean((x - mean) ** 2, axis=-1, keepdims=True)
    xn = (x - mean) / jnp.sqrt(var + LN_EPS) * gamma + beta
    y = xn @ weight.T + bias
    y = jnp.where(y >= 0, y, NEG_SLOPE * y)
    return (x + y).astype(vertices.dtype)


if __name__ == "__main__":
    batch, seq, embedding_dim = 2, 8, 32

    key = jax.random.PRNGKey(0)
    k_x, k_w, k_b = jax.random.split(key, 3)

    vertices = jax.random.normal(k_x, (batch, seq, embedding_dim), dtype=jnp.float32)

    # Deterministic parameter init (shapes match nn.Linear(E, E) + nn.LayerNorm(E)).
    bound = 1.0 / jnp.sqrt(embedding_dim)
    weight = jax.random.uniform(k_w, (embedding_dim, embedding_dim),
                                minval=-bound, maxval=bound, dtype=jnp.float32)
    bias = jax.random.uniform(k_b, (embedding_dim,),
                              minval=-bound, maxval=bound, dtype=jnp.float32)
    gamma = jnp.ones((embedding_dim,), dtype=jnp.float32)   # nn.LayerNorm default weight
    beta = jnp.zeros((embedding_dim,), dtype=jnp.float32)   # nn.LayerNorm default bias

    out = residual_block(vertices, gamma, beta, weight, bias)
    jax.block_until_ready(out)

    ref = _reference(vertices, gamma, beta, weight, bias)
    assert out.shape == vertices.shape
    assert jnp.allclose(out, ref, atol=2e-5, rtol=2e-5), "mismatch vs reference"

    print("KERNEL_OK")
</pallas_src>

<mosaic_0001>
module attributes {stable_mosaic.version = 11 : i64} {
  func.func @_residual_block_kernel(%arg0: i32, %arg1: memref<8x32xf32, #tpu.memory_space<vmem>>, %arg2: memref<3x32xf32, #tpu.memory_space<vmem>>, %arg3: memref<32x32xf32, #tpu.memory_space<vmem>>, %arg4: memref<8x32xf32, #tpu.memory_space<vmem>>) attributes {dimension_semantics = [#tpu.dimension_semantics<parallel>], iteration_bounds = array<i64: 2>, scalar_prefetch = 0 : i64, scratch_operands = 0 : i64, tpu.core_type = #tpu.core_type<tc>, window_params = [{transform_indices = @transform_0, window_bounds = array<i64: 8, 32>}, {pipeline_mode = #tpu.pipeline_mode<synchronous>, transform_indices = @transform_1, window_bounds = array<i64: 3, 32>}, {pipeline_mode = #tpu.pipeline_mode<synchronous>, transform_indices = @transform_2, window_bounds = array<i64: 32, 32>}, {transform_indices = @transform_3, window_bounds = array<i64: 8, 32>}]} {
    %c0 = arith.constant 0 : index
    %c0_0 = arith.constant 0 : index
    %0 = vector.load %arg1[%c0, %c0_0] : memref<8x32xf32, #tpu.memory_space<vmem>>, vector<8x32xf32>
    %cst = arith.constant dense<0.000000e+00> : vector<8xf32>
    %1 = vector.multi_reduction <add>, %0, %cst [1] : vector<8x32xf32> to vector<8xf32>
    %2 = vector.shape_cast %1 : vector<8xf32> to vector<8x1xf32>
    %cst_1 = arith.constant 3.125000e-02 : f32
    %3 = vector.broadcast %cst_1 : f32 to vector<8x1xf32>
    %4 = arith.mulf %2, %3 : vector<8x1xf32>
    %5 = vector.broadcast %4 : vector<8x1xf32> to vector<8x32xf32>
    %6 = arith.subf %0, %5 : vector<8x32xf32>
    %7 = arith.mulf %6, %6 : vector<8x32xf32>
    %cst_2 = arith.constant dense<0.000000e+00> : vector<8xf32>
    %8 = vector.multi_reduction <add>, %7, %cst_2 [1] : vector<8x32xf32> to vector<8xf32>
    %9 = vector.shape_cast %8 : vector<8xf32> to vector<8x1xf32>
    %cst_3 = arith.constant 3.125000e-02 : f32
    %10 = vector.broadcast %cst_3 : f32 to vector<8x1xf32>
    %11 = arith.mulf %9, %10 : vector<8x1xf32>
    %c0_4 = arith.constant 0 : index
    %c0_5 = arith.constant 0 : index
    %12 = vector.load %arg2[%c0_4, %c0_5] : memref<3x32xf32, #tpu.memory_space<vmem>>, vector<1x32xf32>
    %c1 = arith.constant 1 : index
    %c0_6 = arith.constant 0 : index
    %13 = vector.load %arg2[%c1, %c0_6] : memref<3x32xf32, #tpu.memory_space<vmem>>, vector<1x32xf32>
    %c2 = arith.constant 2 : index
    %c0_7 = arith.constant 0 : index
    %14 = vector.load %arg2[%c2, %c0_7] : memref<3x32xf32, #tpu.memory_space<vmem>>, vector<1x32xf32>
    %cst_8 = arith.constant 9.99999974E-6 : f32
    %15 = vector.broadcast %cst_8 : f32 to vector<8x1xf32>
    %16 = arith.addf %11, %15 : vector<8x1xf32>
    %17 = math.rsqrt %16 : vector<8x1xf32>
    %18 = vector.broadcast %17 : vector<8x1xf32> to vector<8x32xf32>
    %19 = arith.mulf %6, %18 : vector<8x32xf32>
    %20 = vector.broadcast %12 : vector<1x32xf32> to vector<8x32xf32>
    %21 = arith.mulf %19, %20 : vector<8x32xf32>
    %22 = vector.broadcast %13 : vector<1x32xf32> to vector<8x32xf32>
    %23 = arith.addf %21, %22 : vector<8x32xf32>
    %c0_9 = arith.constant 0 : index
    %c0_10 = arith.constant 0 : index
    %24 = vector.load %arg3[%c0_9, %c0_10] : memref<32x32xf32, #tpu.memory_space<vmem>>, vector<32x32xf32>
    %cst_11 = arith.constant dense<0.000000e+00> : vector<8x32xf32>
    %25 = tpu.matmul %23, %24, %cst_11 {dimension_numbers = #tpu.dot_dimension_numbers<[1], [0], [0], [1], [0, 0, 1, 1], [], []>} : vector<8x32xf32>, vector<32x32xf32>, vector<8x32xf32> -> vector<8x32xf32>
    %26 = vector.broadcast %14 : vector<1x32xf32> to vector<8x32xf32>
    %27 = arith.addf %25, %26 : vector<8x32xf32>
    %cst_12 = arith.constant 0.000000e+00 : f32
    %28 = vector.broadcast %cst_12 : f32 to vector<8x32xf32>
    %29 = arith.cmpf oge, %27, %28 : vector<8x32xf32>
    %cst_13 = arith.constant 0.00999999977 : f32
    %30 = vector.broadcast %cst_13 : f32 to vector<8x32xf32>
    %31 = arith.mulf %30, %27 : vector<8x32xf32>
    %32 = arith.select %29, %27, %31 : vector<8x32xi1>, vector<8x32xf32>
    %33 = arith.addf %0, %32 : vector<8x32xf32>
    %c0_14 = arith.constant 0 : index
    %c0_15 = arith.constant 0 : index
    %34 = vector.load %arg4[%c0_14, %c0_15] : memref<8x32xf32, #tpu.memory_space<vmem>>, vector<8x32xf32>
    tpu.vector_store %arg4[%c0_14, %c0_15], %33 {strides = array<i32>} : memref<8x32xf32, #tpu.memory_space<vmem>>, vector<8x32xf32>,
    return
  }
  func.func @transform_0(%arg0: i32) -> (i32, i32) {
    %c0_i32 = arith.constant 0 : i32
    %c0_i32_0 = arith.constant 0 : i32
    return %arg0, %c0_i32 : i32, i32
  }
  func.func @transform_1(%arg0: i32) -> (i32, i32) {
    %c0_i32 = arith.constant 0 : i32
    %c0_i32_0 = arith.constant 0 : i32
    %c0_i32_1 = arith.constant 0 : i32
    return %c0_i32, %c0_i32_0 : i32, i32
  }
  func.func @transform_2(%arg0: i32) -> (i32, i32) {
    %c0_i32 = arith.constant 0 : i32
    %c0_i32_0 = arith.constant 0 : i32
    %c0_i32_1 = arith.constant 0 : i32
    return %c0_i32, %c0_i32_0 : i32, i32
  }
  func.func @transform_3(%arg0: i32) -> (i32, i32) {
    %c0_i32 = arith.constant 0 : i32
    %c0_i32_0 = arith.constant 0 : i32
    return %arg0, %c0_i32 : i32, i32
  }
}

</mosaic_0001>

<bundles_post_ra>
// kernel: tpu_custom_call.1
= control target key start
LH: loop header
LB: loop body
LE: loop exit
PB: predicated region body
PF: predicated region fallthrough
CT: control target
= control target key end

     0   :  { %8 = vsyncpa [#allocation3], 0  ;;  %s963_s0 = inlined_call_operand.hbm [shape: f32[16,32], index: 0, kind: input, shape index: {}]   ;;  %s964_s1 = inlined_call_operand.hbm [shape: f32[3,32], index: 1, kind: input, shape index: {}]   ;;  %s965_s2 = inlined_call_operand.hbm [shape: f32[32,32], index: 2, kind: input, shape index: {}]   ;;  %s966_s3 = inlined_call_operand.hbm [shape: f32[16,32], index: 3, kind: output, shape index: {}]  }
   0x1   :  { %10 = vsyncpa [#allocation3 + $0x1], 0 }
   0x2   :  { %11 = vsyncpa [#allocation6], 0 }
   0x3   :  { %12 = vsyncpa [#allocation4], 0 }
   0x4   :  { %14 = vsyncpa [#allocation4 + $0x1], 0  ;;  %s733_s12 = smov 0   ;;  %s735_s13 = smov 0  }
   0x5   :  { %s737_s14 = smov 0   ;;  %s739_s15 = smov 0  }
   0x6 LB: > { %s754_s16 = sadd.s32 4294967295, %s702_s15   ;;  %s430_s17 = sadd.s32 4294967294, %s702_s15   ;;  %s702_s15 = sphi %s739_s15, %s986_s15   ;;  %s698_s14 = sphi %s737_s14, %s985_s14   ;;  %s694_s13 = sphi %s735_s13, %s984_s13   ;;  %s690_s12 = sphi %s733_s12, %s983_s12  }
   0x7   : > { %p40_p0 = scmp.ne.s32.totalorder %s694_s13, %s690_s12  ;;  %p967_p1 = scmp.eq.s32.totalorder %s754_s16, 0 }
   0x8   : > { %p112_p3 = scmp.eq.s32.totalorder %s430_s17, 1  ;;  %p431_p5 = scmp.ge.s32.totalorder %s702_s15, 1 }
   0x9   : > { %p763_p4 = por %p967_p1, %p40_p0  ;;  %p119_p7 = scmp.lt.s32.totalorder %s702_s15, 3 }
   0xa   : > { %p768_p6 = por %p112_p3, %p40_p0  ;;  %s704_s21 = smov [#allocation5]  }
   0xb   : > { %s970_s18 = scalar_select %p763_p4, 1, 0 }
   0xc   : > { %s971_s19 = scalar_select %p768_p6, 1, 0 }
   0xd   : > { %p773_p8 = pnand %p431_p5, %p119_p7  ;;  %s132_s22 = sshll.u32 %s704_s21, 4  ;;  %s133_s22 = int_to_ptr.vmem [resolvable:$true] %s132_s22 }
   0xe   : > { %s705_s23 = smov [#allocation7]   ;;  %s546_s28 = scalar_lea.hbm %s964_s1, 64 }
   0xf   : > { %s972_s20 = scalar_select %p773_p8, 1, 0 }
  0x10   : > { %p484_p10 = pneg %p773_p8  ;;  %s142_s24 = sshll.u32 %s705_s23, 4  ;;  %s786_s24 = int_to_ptr.vmem [resolvable:$true] %s142_s24 }
  0x11   : > { %p547_p12 = scmp.ne.s32.totalorder %s964_s1, %s546_s28  ;;  %p553_p5 = scmp.lt.u32.totalorder %s546_s28, %s964_s1 }
  0x12   : > { %p782_p11 = pnand %p484_p10, %p967_p1 }
  0x14   : > { %p548_p13 = pneg %p782_p11 }
  0x16   : > { %p549_p0 = pnand %p548_p13, %p547_p12 }
  0x18   : > { %p550_p3 = pneg %p549_p0 }
  0x1a   : > { %p555_p7 = pnand %p553_p5, %p550_p3 }
  0x1c   : > { %558 = shalt.err (!%p555_p7)
}
  0x1d   : > { %s559_s6 = scalar_lea.vmem %s133_s22, 64  ;;  %p567_p2 = scmp.lt.s32.totalorder %s133_s22, %s133_s22 }
  0x1e   : > { %p560_p10 = scmp.ne.s32.totalorder %s133_s22, %s559_s6  ;;  %p568_p6 = scmp.lt.s32.totalorder %s559_s6, %s559_s6 }
  0x20   : > { %p562_p9 = pnand %p560_p10, %p548_p13  ;;  %p569_p4 = por %p568_p6, %p567_p2 }
  0x22   : > { %p563_p1 = pneg %p562_p9 }
  0x24   : > { %p570_p8 = pnand %p569_p4, %p563_p1 }
  0x26   : > { %573 = shalt.err (!%p570_p8)
}
  0x27   : > { %487 = dma.hbm_to_vmem [thread:$0]  (!%p782_p11), %s964_s1, 64, %s133_s22, [#allocation6]  }
  0x28   : > { %s574_s11 = scalar_lea.hbm %s965_s2, 512 }
  0x29   : > { %p575_p9 = scmp.ne.s32.totalorder %s965_s2, %s574_s11  ;;  %p581_p4 = scmp.lt.u32.totalorder %s574_s11, %s965_s2 }
  0x2b   : > { %p577_p2 = pnand %p575_p9, %p548_p13 }
  0x2d   : > { %p578_p1 = pneg %p577_p2 }
  0x2f   : > { %p583_p6 = pnand %p581_p4, %p578_p1 }
  0x31   : > { %586 = shalt.err (!%p583_p6)
}
  0x32   : > { %s587_s22 = scalar_lea.vmem %s786_s24, 512  ;;  %p595_p3 = scmp.lt.s32.totalorder %s786_s24, %s786_s24 }
  0x33   : > { %p588_p8 = scmp.ne.s32.totalorder %s786_s24, %s587_s22  ;;  %p596_p5 = scmp.lt.s32.totalorder %s587_s22, %s587_s22 }
  0x35   : > { %p590_p12 = pnand %p588_p8, %p548_p13  ;;  %p597_p7 = por %p596_p5, %p595_p3 }
  0x37   : > { %p591_p0 = pneg %p590_p12 }
  0x39   : > { %p598_p10 = pnand %p597_p7, %p591_p0 }
  0x3b   : > { %601 = shalt.err (!%p598_p10)
}
  0x3c   : > { %s706_s27 = smov 128   ;;  %s707_s28 = smov 8  }
  0x3d   : > { %490 = dma.hbm_to_vmem [thread:$0]  (!%p782_p11), %s965_s2, 512, %s786_s24, [#allocation6], %s706_s27, %s706_s27, %s707_s28  }
  0x3e   : > { %s836_s4 = sadd.s32 1, %s702_s15   ;;  %s27_s5 = sadd.s32 1, %s698_s14 }
  0x3f   : > { %s24_s6 = ssub.s32 %s702_s15, %s836_s4  ;;  %p34_p13 = scmp.ne.s32.totalorder %s698_s14, %s694_s13 }
  0x40   : > { %p25_p9 = scmp.eq.s32.totalorder %s24_s6, 0  ;;  %p35_p2 = scmp.eq.s32.totalorder %s702_s15, 0 }
  0x41   : > { %p974_p1 = scmp.eq.s32.totalorder %s754_s16, 1  ;;  %p501_p6 = scmp.lt.s32.totalorder %s702_s15, 2 }
  0x42   : > { %s852_s8 = scalar_select %p25_p9, %s698_s14, %s27_s5  }
  0x43   : > { %p846_p4 = por %p974_p1, %p34_p13  ;;  %p36_p8 = por %p35_p2, %p34_p13 }
  0x44   : > { %s156_s25 = sand.u32 1, %s698_s14   ;;  %s436_s24 = sshll.u32 %s702_s15, 7 }
  0x45   : > { %s435_s9 = sshll.u32 %s156_s25, 3  ;;  %s859_s17 = scalar_lea.hbm %s963_s0, %s436_s24 }
  0x46   : > { %s160_s21 = scalar_lea.vmem [#allocation2], %s435_s9  ;;  %p863_p11 = pnand %p501_p6, %p36_p8 }
  0x47   : > { %s167_s23 = sshll.u32 %s160_s21, 4  ;;  %s157_s22 = scalar_lea.sflag [#allocation3], %s156_s25  ;;  %s861_s23 = int_to_ptr.vmem [resolvable:$true] %s167_s23 }
  0x48   : > { %s602_s27 = scalar_lea.hbm %s859_s17, 128  ;;  %p604_p0 = pneg %p863_p11 }
  0x49   : > { %p603_p12 = scmp.ne.s32.totalorder %s859_s17, %s602_s27  ;;  %s607_s30 = scalar_lea.hbm %s963_s0, 256 }
  0x4a   : > { %p608_p7 = scmp.lt.u32.totalorder %s859_s17, %s963_s0  ;;  %p609_p10 = scmp.lt.u32.totalorder %s607_s30, %s602_s27 }
  0x4b   : > { %p605_p3 = pnand %p604_p0, %p603_p12  ;;  %p611_p9 = scmp.lt.u32.totalorder %s602_s27, %s859_s17 }
  0x4c   : > { %p610_p13 = por %p609_p10, %p608_p7 }
  0x4d   : > { %p606_p5 = pneg %p605_p3 }
  0x4e   : > { %p612_p2 = por %p611_p9, %p610_p13 }
  0x50   : > { %p613_p1 = pnand %p612_p2, %p606_p5 }
  0x52   : > { %616 = shalt.err (!%p613_p1)
}
  0x53   : > { %s617_s25 = scalar_lea.vmem %s861_s23, 128  ;;  %s708_s9 = smov [#allocation2]  }
  0x54   : > { %p618_p6 = scmp.ne.s32.totalorder %s861_s23, %s617_s25  ;;  %s622_s24 = sshll.u32 %s708_s9, 4  ;;  %s623_s24 = int_to_ptr.vmem [resolvable:$false] %s622_s24 }
  0x55   : > { %s624_s10 = scalar_lea.vmem %s623_s24, 256  ;;  %p625_p3 = scmp.lt.s32.totalorder %s861_s23, %s623_s24 }
  0x56   : > { %p620_p8 = pnand %p618_p6, %p604_p0  ;;  %p626_p7 = scmp.lt.s32.totalorder %s624_s10, %s617_s25 }
  0x58   : > { %p621_p12 = pneg %p620_p8  ;;  %p627_p10 = por %p626_p7, %p625_p3 }
  0x5a   : > { %p628_p13 = pnand %p627_p10, %p621_p12 }
  0x5c   : > { %631 = shalt.err (!%p628_p13)
}
  0x5d   : > { %494 = dma.hbm_to_vmem [thread:$0]  (!%p863_p11), %s859_s17, 128, %s861_s23, %s157_s22  }
  0x5e   : > { %p977_p5 = scmp.ne.s32.totalorder %s972_s20, 0 }
  0x5f   : > { %s895_s11 = sand.u32 (!%p977_p5), 1, %s694_s13   ;;  %p978_p0 = scmp.ne.s32.totalorder (!%p977_p5), %s970_s18, 0 }
  0x60   : > { %176 = sbr.rel (%p977_p5) target bundleno = 654 (0x28e), region = 32  ;;  %s438_s21 = sshll.u32 (!%p977_p5), %s895_s11, 3 }
  0x61   : > { %s179_s27 = scalar_lea.sflag (!%p977_p5), [#allocation3], %s895_s11  ;;  %s182_s28 = scalar_lea.vmem (!%p977_p5), [#allocation2], %s438_s21 }
  0x67   : > { %677 = dma.done.wait (%p978_p0), %s179_s27, 128  }
  0x68   : > { %679 = vsyncadd (%p978_p0), %s179_s27, 4294967168  ;;  %p979_p11 = scmp.eq.s32.totalorder %s754_s16, 0 }
  0x6a   : > { %681 = dma.done.wait (%p979_p11), [#allocation6], 576   ;;  %p980_p9 = pmov %p979_p11 }
  0x6b   : > { %vm214_vm0 = vcmask 261120   ;;  %v213_v0 = vld [vmem:[%s182_s28] sm:$0xff]  ;;  %v241_v7 = vld [vmem:[#allocation7] sm:$0xff]  ;;  %v709_v10 = vmov 0.0|0.0   ;;  %vm710_vm1 = vmmov 0   ;;  %v711_v13 = vmov 0.0  }
  0x6c   : > { %683 = vsyncadd (%p980_p9), [#allocation6], 4294966720  ;;  %v215_v1 = vsel %vm214_vm0, %v213_v0, 0.0  ;;  %v242_v8 = vld [vmem:[#allocation7 + $0x8] sm:$0xff]  ;;  %v243_v9 = vld [vmem:[#allocation7 + $0x10] sm:$0xff]  ;;  %466 = vmatprep.subr.bf16.mxu0 %v709_v10  ;;  %463 = vmatprep.mubr.msk.f32.mxu0 %vm710_vm1, %v711_v13  ;;  %s447_s18 = sshll.u32 %s754_s16, 7 }
  0x6d   : > { %216 = vadd.xlane.f32.xlu0 %v215_v1  ;;  %v467_v11 = vpack.c.bf16 %v242_v8, %v241_v7  ;;  %v244_v12 = vld [vmem:[#allocation7 + $0x18] sm:$0xff]  ;;  %s212_s20 = scalar_lea.vmem [#allocation8], %s438_s21  ;;  %s918_s22 = scalar_lea.hbm %s966_s3, %s447_s18 }
  0x6e   : > { %v470_v14 = vpack.c.bf16 %v244_v12, %v243_v9  ;;  %v442_v19 = vld [vmem:[#allocation5] ss:$0 sm:$0xff]  ;;  %v443_v21 = vld [vmem:[#allocation5 + $0x1] ss:$0 sm:$0xff]  ;;  %v444_v24 = vld [vmem:[#allocation5 + $0x2] ss:$0 sm:$0xff] }
  0x6f   : > { %468 = vmatpush3.bf16.msra.mxu0 %v467_v11  ;;  %s341_s17 = sshll.u32 %s212_s20, 4  ;;  %s328_s29 = scalar_lea.sflag [#allocation4], %s895_s11  ;;  %s920_s17 = int_to_ptr.vmem [resolvable:$true] %s341_s17 }
  0x70   : > { %469 = vmatprep.subr.bf16.mxu0 %v709_v10  ;;  %s632_s30 = scalar_lea.vmem %s920_s17, 128  ;;  %s712_s16 = smov [#allocation8]  }
  0x71   : > { %p633_p2 = scmp.ne.s32.totalorder %s920_s17, %s632_s30  ;;  %s636_s5 = sshll.u32 %s712_s16, 4  ;;  %s637_s5 = int_to_ptr.vmem [resolvable:$false] %s636_s5 }
  0x72   : > { %s638_s6 = scalar_lea.vmem %s637_s5, 256  ;;  %p639_p8 = scmp.lt.s32.totalorder %s920_s17, %s637_s5 }
  0x73   : > { %471 = vmatpush3.bf16.msra.mxu0 %v470_v14  ;;  %p634_p1 = pnand %p633_p2, %p846_p4  ;;  %p640_p12 = scmp.lt.s32.totalorder %s638_s6, %s632_s30 }
  0x75   : > { %p635_p6 = pneg %p634_p1  ;;  %p641_p3 = por %p640_p12, %p639_p8 }
  0x77   : > { %p642_p7 = pnand %p641_p3, %p635_p6 }
  0xfa   : > { %v217_v2 = vpop.xlane.xlu0 %216 }
  0xfb   : > { %v218_v3 = vmul.f32 0.03125, %v217_v2 }
  0xfd   : > { %v219_v4 = vsub.f32 %v213_v0, %v218_v3 }
  0xff   : > { %v220_v5 = vmul.f32 %v219_v4, %v219_v4 }
 0x101   : > { %v221_v6 = vsel %vm214_vm0, %v220_v5, 0.0 }
 0x102   : > { %222 = vadd.xlane.f32.xlu0 %v221_v6 }
 0x18f   : > { %v223_v15 = vpop.xlane.xlu0 %222 }
 0x190   : > { %v224_v16 = vmul.f32 0.03125, %v223_v15 }
 0x192   : > { %v228_v17 = vadd.f32 1e-05, %v224_v16 }
 0x194   : > { %544 = vrsqrt.f32 %v228_v17 }
 0x19e   : > { %v545_v18 = vpop.eup %544 }
 0x19f   : > { %v230_v20 = vmul.f32 %v545_v18, %v219_v4 }
 0x1a1   : > { %v235_v22 = vmul.f32 %v442_v19, %v230_v20 }
 0x1a3   : > { %v240_v23 = vadd.f32 %v443_v21, %v235_v22 }
 0x1a5   : > { %464 = vmatmul.mubr.msk.f32.vlgmr.msra.gmra.mrb[0].mxu0 %vm214_vm0, %v240_v23 }
 0x278   : > { %v318_v25 = vpop.f32.mrb[0].mxu0 }
 0x279   : > { %v319_v26 = vadd.f32 %v444_v24, %v318_v25  ;;  %v465_v27 = vpop.f32.mrb[1].mxu0 }
 0x27b   : > { %vm322_vm2 = vcmp.ge.f32.partialorder %v319_v26, 0.0  ;;  %v323_v28 = vmul.f32 0.01, %v319_v26 }
 0x27d   : > { %v324_v29 = vsel %vm322_vm2, %v319_v26, %v323_v28 }
 0x27e   : > { %v325_v30 = vadd.f32 %v324_v29, %v213_v0 }
 0x280   : > { %326 = vst.msk [vmem:[%s212_s20] sm:$0xff] %vm214_vm0, %v325_v30 }
 0x281   : > { %645 = shalt.err (!%p642_p7)
}
 0x282   : > { %s646_s25 = scalar_lea.hbm %s918_s22, 128  ;;  %s650_s10 = scalar_lea.hbm %s966_s3, 256 }
 0x283   : > { %p647_p10 = scmp.ne.s32.totalorder %s918_s22, %s646_s25  ;;  %p651_p0 = scmp.lt.u32.totalorder %s918_s22, %s966_s3 }
 0x284   : > { %p652_p11 = scmp.lt.u32.totalorder %s650_s10, %s646_s25  ;;  %p654_p2 = scmp.lt.u32.totalorder %s646_s25, %s918_s22 }
 0x285   : > { %p648_p13 = pnand %p647_p10, %p846_p4 }
 0x286   : > { %p653_p9 = por %p652_p11, %p651_p0 }
 0x287   : > { %p649_p5 = pneg %p648_p13 }
 0x288   : > { %p655_p1 = por %p654_p2, %p653_p9 }
 0x28a   : > { %p656_p6 = pnand %p655_p1, %p649_p5 }
 0x28c   : > { %659 = shalt.err (!%p656_p6)
}
 0x28d   : > { %482 = dma.vmem_to_hbm [thread:$0]  (%p846_p4), %s920_s17, 128, %s918_s22, %s328_s29  }
 0x28e PF: > { %s353_s27 = sand.u32 1, %s690_s12   ;;  %p981_p8 = scmp.ne.s32.totalorder %s971_s19, 0 }
 0x28f   : > { %p982_p12 = scmp.ge.s32.totalorder %s702_s15, 2  ;;  %s354_s28 = scalar_lea.sflag [#allocation4], %s353_s27 }
 0x291   : > { %p496_p3 = pnand %p982_p12, %p981_p8 }
 0x293   : > { %685 = dma.done.wait (!%p496_p3), %s354_s28, 128  }
 0x294   : > { %687 = vsyncadd (!%p496_p3), %s354_s28, 4294967168  ;;  %p17_p7 = scmp.ge.s32.totalorder %s836_s4, 4   ;;  %s983_s12 = smov %s694_s13 }
 0x295   : > { %s984_s13 = smov %s698_s14  ;;  %s985_s14 = smov %s852_s8 }
 0x296   : > { %s986_s15 = smov %s836_s4  ;;  %19 = sbr.rel (!%p17_p7) target bundleno = 6 (0x6), region = 85 }
 0x29d   :  { %359 = vsyncpa [#allocation3], 1 }
 0x29e   :  { %361 = vsyncpa [#allocation3 + $0x1], 1 }
 0x29f   :  { %362 = vsyncpa [#allocation6], 1 }
 0x2a0   :  { %363 = vsyncpa [#allocation4], 1 }
 0x2a1   :  { %365 = vsyncpa [#allocation4 + $0x1], 1 }

</bundles_post_ra>
